<compile_context>
chip_gen: v6e
topology: v6e:2x2x1
jax: 0.10.0
libtpu: 0.0.40
codegen_flags: <defaults>
</compile_context>

<pallas_src>
import functools

import jax
import jax.numpy as jnp
from jax.experimental import pallas as pl
from jax.experimental.pallas import tpu as pltpu

LANES = 128
SUBLANES = 8
TILE_ROWS = 2048   # (2048, 128) f32 block = 1 MiB per input per grid step

_NUM_PARTS_CACHE = None


def _num_tensorcores():
    """Best-effort TensorCores-per-kernel detection (2 on megacore/v7x, 1 on v5e/v6e).

    Defaults to 2: on 1-TC chips the extra partition only costs one tiny
    clamped duplicate-tile DMA and a second epilogue write.
    """
    try:
        info = pltpu.get_tpu_info()
        for name in ("num_cores", "core_count", "num_tensorcores",
                     "tensorcore_count", "cores_per_chip"):
            v = getattr(info, name, None)
            if isinstance(v, int) and v >= 1:
                return v
    except Exception:
        pass
    try:
        kind = jax.devices()[0].device_kind.lower()
        if any(s in kind for s in ("v5 lite", "v5e", "v5lite",
                                   "v6 lite", "v6e", "v6lite")):
            return 1
    except Exception:
        pass
    return 2


def _num_parts():
    global _NUM_PARTS_CACHE
    if _NUM_PARTS_CACHE is None:
        _NUM_PARTS_CACHE = max(1, _num_tensorcores())
    return _NUM_PARTS_CACHE


def _make_loss_sums_kernel(n, tile_rows, tiles_per_part, binary_targets):
    """Kernel closure over static sizes (shapes are static, so no scalar prefetch)."""
    chunk = tile_rows * LANES

    def elementwise(p, t):
        if binary_targets:
            # Single-log path: exact for t in {0,1} (incl. the -100 clamp).
            arg = jnp.where(t > 0.5, p, 1.0 - p)
            bce = -jnp.maximum(jnp.log(arg), -100.0)
        else:
            # General PyTorch BCELoss formulation with log clamping at -100.
            log_p = jnp.maximum(jnp.log(p), -100.0)
            log_1mp = jnp.maximum(jnp.log(1.0 - p), -100.0)
            bce = -(t * log_p + (1.0 - t) * log_1mp)
        return bce, p * t, p + t

    def accumulate(acc_bce, acc_int, acc_den, bce, inter, den):
        # Pre-reduce each (tile_rows,128) quantity to (8,128) before the RMW:
        # turns full-tile accumulator load/store traffic into pure VALU adds.
        acc_bce[...] += jnp.sum(bce.reshape(-1, SUBLANES, LANES), axis=0)
        acc_int[...] += jnp.sum(inter.reshape(-1, SUBLANES, LANES), axis=0)
        acc_den[...] += jnp.sum(den.reshape(-1, SUBLANES, LANES), axis=0)

    def kernel(p_ref, t_ref, out_ref, acc_bce, acc_int, acc_den):
        part = pl.program_id(0)
        i = pl.program_id(1)

        # (Re)initialize per-partition accumulators at the start of each partition.
        @pl.when(i == 0)
        def _():
            acc_bce[...] = jnp.zeros_like(acc_bce)
            acc_int[...] = jnp.zeros_like(acc_int)
            acc_den[...] = jnp.zeros_like(acc_den)

        base = (part * tiles_per_part + i) * chunk
        # Only the true tail tile AND index-clamped duplicate tiles (base >= n)
        # need masking; interior tiles take the mask-free fast path.
        needs_mask = base + chunk > n

        @pl.when(jnp.logical_not(needs_mask))
        def _():
            p = p_ref[...].astype(jnp.float32)
            t = t_ref[...].astype(jnp.float32)
            bce, inter, den = elementwise(p, t)
            accumulate(acc_bce, acc_int, acc_den, bce, inter, den)

        @pl.when(needs_mask)
        def _():
            row_ids = jax.lax.broadcasted_iota(jnp.int32, (tile_rows, LANES), 0)
            lane_ids = jax.lax.broadcasted_iota(jnp.int32, (tile_rows, LANES), 1)
            mask = (base + row_ids * LANES + lane_ids) < n
            p = jnp.where(mask, p_ref[...].astype(jnp.float32), 0.0)
            t = jnp.where(mask, t_ref[...].astype(jnp.float32), 0.0)
            bce, inter, den = elementwise(p, t)
            accumulate(acc_bce, acc_int, acc_den, bce, inter, den)

        # Single fused, lane-dense epilogue write per partition.
        @pl.when(i == pl.num_programs(1) - 1)
        def _():
            out_ref[...] = jnp.concatenate(
                [acc_bce[...], acc_int[...], acc_den[...]],
                axis=0).reshape(1, 3 * SUBLANES, LANES)

    return kernel


@functools.partial(jax.jit, static_argnums=(2, 3, 4))
def _loss_sums(pred_2d, target_2d, n, num_parts, binary_targets):
    rows = pred_2d.shape[0]            # always a multiple of 8 (see _flatten)
    tile_rows = min(TILE_ROWS, rows)
    num_blocks = max(pl.cdiv(rows, tile_rows), 1)
    parts = max(1, min(num_parts, num_blocks))
    tiles_per_part = pl.cdiv(num_blocks, parts)
    last_block = num_blocks - 1

    def in_index_map(part, i):
        # Clamp fully-out-of-range tiles back onto a valid block; their
        # contribution is killed by the in-kernel mask path anyway.
        return (jnp.minimum(part * tiles_per_part + i, last_block), 0)

    in_spec = pl.BlockSpec((tile_rows, LANES), in_index_map)
    out_spec = pl.BlockSpec((1, 3 * SUBLANES, LANES), lambda part, i: (part, 0, 0))
    out_shape = jax.ShapeDtypeStruct((parts, 3 * SUBLANES, LANES), jnp.float32)

    bytes_in = n * (pred_2d.dtype.itemsize + target_2d.dtype.itemsize)
    cost = pl.CostEstimate(flops=10 * n,
                           transcendentals=(1 if binary_targets else 2) * n,
                           bytes_accessed=bytes_in)

    sums = pl.pallas_call(
        _make_loss_sums_kernel(n, tile_rows, tiles_per_part, binary_targets),
        out_shape=out_shape,
        grid_spec=pltpu.PrefetchScalarGridSpec(
            num_scalar_prefetch=0,
            grid=(parts, tiles_per_part),
            in_specs=[in_spec, in_spec],
            out_specs=out_spec,
            scratch_shapes=[pltpu.VMEM((SUBLANES, LANES), jnp.float32)
                            for _ in range(3)],
        ),
        compiler_params=pltpu.CompilerParams(
            dimension_semantics=("parallel", "arbitrary")),
        cost_estimate=cost,
    )(pred_2d, target_2d)

    bce_sum = jnp.sum(sums[:, 0:SUBLANES, :])
    inter = jnp.sum(sums[:, SUBLANES:2 * SUBLANES, :])
    denom = jnp.sum(sums[:, 2 * SUBLANES:3 * SUBLANES, :])
    return bce_sum, inter, denom


def _flatten(x):
    """Flatten to (rows, 128) in native dtype (no host-side f32 cast).

    Pads only to a multiple of 8*128 elements (so rows % 8 == 0, which the
    in-kernel (8,128) pre-reduce requires); padding is masked in-kernel.
    """
    flat = jnp.reshape(x, (-1,))
    n = flat.shape[0]
    row_chunk = SUBLANES * LANES
    padded = ((n + row_chunk - 1) // row_chunk) * row_chunk
    if padded != n:
        flat = jnp.pad(flat, (0, padded - n))
    return jnp.reshape(flat, (padded // LANES, LANES)), n


def total_loss_forward(predictions, targets, loss_weights, smooth=1e-6,
                       binary_targets=False):
    """JAX equivalent of TotalLoss.forward for plain-tensor pred/target.

    Set binary_targets=True only when targets are guaranteed {0,1}; it enables
    the single-log BCE fast path (identical result for binary targets).
    """
    pred_2d, n = _flatten(predictions)
    target_2d, _ = _flatten(targets)

    bce_sum, inter, denom = _loss_sums(pred_2d, target_2d, n, _num_parts(),
                                       bool(binary_targets))

    bce_loss = bce_sum / jnp.float32(n)                  # nn.BCELoss (mean)
    dice = (2.0 * inter + smooth) / (denom + smooth)     # DiceLoss
    dice_loss = 1.0 - dice

    total = loss_weights["bce"] * bce_loss + loss_weights["dice"] * dice_loss
    # NOTE: values stay as lazy jnp scalars -- no float() / device->host sync.
    loss_dict = {"bce": bce_loss, "dice": dice_loss, "total": total}
    return total, loss_dict


def _reference(pred, target, loss_weights, smooth=1e-6):
    p = jnp.reshape(pred, (-1,)).astype(jnp.float32)
    t = jnp.reshape(target, (-1,)).astype(jnp.float32)
    bce = jnp.mean(-(t * jnp.maximum(jnp.log(p), -100.0)
                     + (1.0 - t) * jnp.maximum(jnp.log(1.0 - p), -100.0)))
    inter = jnp.sum(p * t)
    dice = (2.0 * inter + smooth) / (jnp.sum(p) + jnp.sum(t) + smooth)
    return loss_weights["bce"] * bce + loss_weights["dice"] * (1.0 - dice)


if __name__ == "__main__":
    # Deterministic config (stand-in for the PyTorch `config` dict).
    config = {
        "loss_weights": {"bce": 1.0, "dice": 1.0, "edge": 0.5},
        "model": {"use_adversarial": False},
    }
    key = jax.random.PRNGKey(0)
    k1, k2, k3, k4, k5, k6 = jax.random.split(key, 6)

    # 1) Small NCHW case [B, 1, H, W]: general (two-log) BCE path.
    B, C, H, W = 2, 1, 16, 16
    pred = jax.nn.sigmoid(jax.random.normal(k1, (B, C, H, W), jnp.float32))
    target = (jax.random.uniform(k2, (B, C, H, W), jnp.float32) > 0.5).astype(
        jnp.float32)
    total, loss_dict = total_loss_forward(pred, target, config["loss_weights"])
    total = jax.block_until_ready(total)
    ref = _reference(pred, target, config["loss_weights"])
    assert jnp.allclose(total, ref, rtol=1e-5, atol=1e-5), (total, ref)

    # 2) Larger, non-128-aligned case: multi-tile / multi-partition execution,
    #    mask fast-path + tail-mask, binary-target single-log fast path.
    B2, C2, H2, W2 = 3, 1, 350, 350
    pred2 = jax.nn.sigmoid(jax.random.normal(k3, (B2, C2, H2, W2), jnp.float32))
    target2 = (jax.random.uniform(k4, (B2, C2, H2, W2), jnp.float32) > 0.5).astype(
        jnp.float32)
    total2, _ = total_loss_forward(pred2, target2, config["loss_weights"],
                                   binary_targets=True)
    total2 = jax.block_until_ready(total2)
    ref2 = _reference(pred2, target2, config["loss_weights"])
    assert jnp.allclose(total2, ref2, rtol=1e-4, atol=1e-5), (total2, ref2)

    # 3) Narrow-dtype streaming: bf16 predictions + uint8 targets fed straight
    #    into the kernel (upcast happens in-kernel).
    B3, C3, H3, W3 = 2, 1, 64, 64
    pred3 = jax.nn.sigmoid(jax.random.normal(k5, (B3, C3, H3, W3),
                                             jnp.float32)).astype(jnp.bfloat16)
    target3 = (jax.random.uniform(k6, (B3, C3, H3, W3), jnp.float32)
               > 0.5).astype(jnp.uint8)
    total3, _ = total_loss_forward(pred3, target3, config["loss_weights"],
                                   binary_targets=True)
    total3 = jax.block_until_ready(total3)
    ref3 = _reference(pred3, target3, config["loss_weights"])
    assert jnp.allclose(total3, ref3, rtol=1e-4, atol=1e-5), (total3, ref3)

    print("KERNEL_OK")
</pallas_src>

<mosaic_0001>
module attributes {stable_mosaic.version = 11 : i64} {
  func.func @kernel(%arg0: i32, %arg1: i32, %arg2: memref<8x128xf32, #tpu.memory_space<vmem>>, %arg3: memref<8x128xf32, #tpu.memory_space<vmem>>, %arg4: memref<1x24x128xf32, #tpu.memory_space<vmem>>, %arg5: memref<8x128xf32, #tpu.memory_space<vmem>>, %arg6: memref<8x128xf32, #tpu.memory_space<vmem>>, %arg7: memref<8x128xf32, #tpu.memory_space<vmem>>) attributes {dimension_semantics = [#tpu.dimension_semantics<parallel>, #tpu.dimension_semantics<arbitrary>], iteration_bounds = array<i64: 1, 1>, scalar_prefetch = 0 : i64, scratch_operands = 3 : i64, tpu.core_type = #tpu.core_type<tc>, window_params = [{transform_indices = @transform_0, window_bounds = array<i64: 8, 128>}, {transform_indices = @transform_1, window_bounds = array<i64: 8, 128>}, {transform_indices = @transform_2, window_bounds = array<i64: 1, 24, 128>}]} {
    %c0_i32 = arith.constant 0 : i32
    %0 = arith.cmpi eq, %arg1, %c0_i32 : i32
    %1 = arith.extui %0 : i1 to i32
    %c0_i32_0 = arith.constant 0 : i32
    %2 = arith.cmpi ne, %1, %c0_i32_0 : i32
    scf.if %2 {
      %cst = arith.constant 0.000000e+00 : f32
      %16 = vector.broadcast %cst : f32 to vector<8x128xf32>
      %c0 = arith.constant 0 : index
      %c0_6 = arith.constant 0 : index
      %17 = vector.load %arg5[%c0, %c0_6] : memref<8x128xf32, #tpu.memory_space<vmem>>, vector<8x128xf32>
      tpu.vector_store %arg5[%c0, %c0_6], %16 {strides = array<i32>} : memref<8x128xf32, #tpu.memory_space<vmem>>, vector<8x128xf32>,
      %cst_7 = arith.constant 0.000000e+00 : f32
      %18 = vector.broadcast %cst_7 : f32 to vector<8x128xf32>
      %c0_8 = arith.constant 0 : index
      %c0_9 = arith.constant 0 : index
      %19 = vector.load %arg6[%c0_8, %c0_9] : memref<8x128xf32, #tpu.memory_space<vmem>>, vector<8x128xf32>
      tpu.vector_store %arg6[%c0_8, %c0_9], %18 {strides = array<i32>} : memref<8x128xf32, #tpu.memory_space<vmem>>, vector<8x128xf32>,
      %cst_10 = arith.constant 0.000000e+00 : f32
      %20 = vector.broadcast %cst_10 : f32 to vector<8x128xf32>
      %c0_11 = arith.constant 0 : index
      %c0_12 = arith.constant 0 : index
      %21 = vector.load %arg7[%c0_11, %c0_12] : memref<8x128xf32, #tpu.memory_space<vmem>>, vector<8x128xf32>
      tpu.vector_store %arg7[%c0_11, %c0_12], %20 {strides = array<i32>} : memref<8x128xf32, #tpu.memory_space<vmem>>, vector<8x128xf32>,
    } else {
    }
    %c1_i32 = arith.constant 1 : i32
    %3 = arith.muli %arg0, %c1_i32 : i32
    %4 = arith.addi %3, %arg1 : i32
    %c1024_i32 = arith.constant 1024 : i32
    %5 = arith.muli %4, %c1024_i32 : i32
    %c1024_i32_1 = arith.constant 1024 : i32
    %6 = arith.addi %5, %c1024_i32_1 : i32
    %c512_i32 = arith.constant 512 : i32
    %7 = arith.cmpi sgt, %6, %c512_i32 : i32
    %true = arith.constant true
    %8 = arith.xori %7, %true : i1
    %9 = arith.extui %8 : i1 to i32
    %c0_i32_2 = arith.constant 0 : i32
    %10 = arith.cmpi ne, %9, %c0_i32_2 : i32
    scf.if %10 {
      %c0 = arith.constant 0 : index
      %c0_6 = arith.constant 0 : index
      %16 = vector.load %arg2[%c0, %c0_6] : memref<8x128xf32, #tpu.memory_space<vmem>>, vector<8x128xf32>
      %c0_7 = arith.constant 0 : index
      %c0_8 = arith.constant 0 : index
      %17 = vector.load %arg3[%c0_7, %c0_8] : memref<8x128xf32, #tpu.memory_space<vmem>>, vector<8x128xf32>
      %18 = math.log %16 : vector<8x128xf32>
      %cst = arith.constant -1.000000e+02 : f32
      %19 = vector.broadcast %cst : f32 to vector<8x128xf32>
      %20 = arith.maximumf %18, %19 : vector<8x128xf32>
      %cst_9 = arith.constant 1.000000e+00 : f32
      %21 = vector.broadcast %cst_9 : f32 to vector<8x128xf32>
      %22 = arith.subf %21, %16 : vector<8x128xf32>
      %23 = math.log %22 : vector<8x128xf32>
      %cst_10 = arith.constant -1.000000e+02 : f32
      %24 = vector.broadcast %cst_10 : f32 to vector<8x128xf32>
      %25 = arith.maximumf %23, %24 : vector<8x128xf32>
      %26 = arith.mulf %17, %20 : vector<8x128xf32>
      %cst_11 = arith.constant 1.000000e+00 : f32
      %27 = vector.broadcast %cst_11 : f32 to vector<8x128xf32>
      %28 = arith.subf %27, %17 : vector<8x128xf32>
      %29 = arith.mulf %28, %25 : vector<8x128xf32>
      %30 = arith.addf %26, %29 : vector<8x128xf32>
      %cst_12 = arith.constant 0.000000e+00 : f32
      %31 = vector.broadcast %cst_12 : f32 to vector<8x128xf32>
      %32 = arith.subf %31, %30 : vector<8x128xf32>
      %33 = arith.mulf %16, %17 : vector<8x128xf32>
      %34 = arith.addf %16, %17 : vector<8x128xf32>
      %c0_13 = arith.constant 0 : index
      %c0_14 = arith.constant 0 : index
      %35 = vector.load %arg5[%c0_13, %c0_14] : memref<8x128xf32, #tpu.memory_space<vmem>>, vector<8x128xf32>
      %36 = vector.shape_cast %32 : vector<8x128xf32> to vector<1x8x128xf32>
      %cst_15 = arith.constant dense<0.000000e+00> : vector<8x128xf32>
      %37 = vector.multi_reduction <add>, %36, %cst_15 [0] : vector<1x8x128xf32> to vector<8x128xf32>
      %38 = arith.addf %35, %37 : vector<8x128xf32>
      %c0_16 = arith.constant 0 : index
      %c0_17 = arith.constant 0 : index
      %39 = vector.load %arg5[%c0_16, %c0_17] : memref<8x128xf32, #tpu.memory_space<vmem>>, vector<8x128xf32>
      tpu.vector_store %arg5[%c0_16, %c0_17], %38 {strides = array<i32>} : memref<8x128xf32, #tpu.memory_space<vmem>>, vector<8x128xf32>,
      %c0_18 = arith.constant 0 : index
      %c0_19 = arith.constant 0 : index
      %40 = vector.load %arg6[%c0_18, %c0_19] : memref<8x128xf32, #tpu.memory_space<vmem>>, vector<8x128xf32>
      %41 = vector.shape_cast %33 : vector<8x128xf32> to vector<1x8x128xf32>
      %cst_20 = arith.constant dense<0.000000e+00> : vector<8x128xf32>
      %42 = vector.multi_reduction <add>, %41, %cst_20 [0] : vector<1x8x128xf32> to vector<8x128xf32>
      %43 = arith.addf %40, %42 : vector<8x128xf32>
      %c0_21 = arith.constant 0 : index
      %c0_22 = arith.constant 0 : index
      %44 = vector.load %arg6[%c0_21, %c0_22] : memref<8x128xf32, #tpu.memory_space<vmem>>, vector<8x128xf32>
      tpu.vector_store %arg6[%c0_21, %c0_22], %43 {strides = array<i32>} : memref<8x128xf32, #tpu.memory_space<vmem>>, vector<8x128xf32>,
      %c0_23 = arith.constant 0 : index
      %c0_24 = arith.constant 0 : index
      %45 = vector.load %arg7[%c0_23, %c0_24] : memref<8x128xf32, #tpu.memory_space<vmem>>, vector<8x128xf32>
      %46 = vector.shape_cast %34 : vector<8x128xf32> to vector<1x8x128xf32>
      %cst_25 = arith.constant dense<0.000000e+00> : vector<8x128xf32>
      %47 = vector.multi_reduction <add>, %46, %cst_25 [0] : vector<1x8x128xf32> to vector<8x128xf32>
      %48 = arith.addf %45, %47 : vector<8x128xf32>
      %c0_26 = arith.constant 0 : index
      %c0_27 = arith.constant 0 : index
      %49 = vector.load %arg7[%c0_26, %c0_27] : memref<8x128xf32, #tpu.memory_space<vmem>>, vector<8x128xf32>
      tpu.vector_store %arg7[%c0_26, %c0_27], %48 {strides = array<i32>} : memref<8x128xf32, #tpu.memory_space<vmem>>, vector<8x128xf32>,
    } else {
    }
    %11 = arith.extui %7 : i1 to i32
    %c0_i32_3 = arith.constant 0 : i32
    %12 = arith.cmpi ne, %11, %c0_i32_3 : i32
    scf.if %12 {
      %16 = tpu.iota {dimensions = array<i32: 0>} : vector<8x128xi32>
      %17 = tpu.iota {dimensions = array<i32: 1>} : vector<8x128xi32>
      %c128_i32 = arith.constant 128 : i32
      %18 = vector.broadcast %c128_i32 : i32 to vector<8x128xi32>
      %19 = arith.muli %16, %18 : vector<8x128xi32>
      %20 = vector.broadcast %5 : i32 to vector<8x128xi32>
      %21 = arith.addi %20, %19 : vector<8x128xi32>
      %22 = arith.addi %21, %17 : vector<8x128xi32>
      %c512_i32_6 = arith.constant 512 : i32
      %23 = vector.broadcast %c512_i32_6 : i32 to vector<8x128xi32>
      %24 = arith.cmpi slt, %22, %23 : vector<8x128xi32>
      %c0 = arith.constant 0 : index
      %c0_7 = arith.constant 0 : index
      %25 = vector.load %arg2[%c0, %c0_7] : memref<8x128xf32, #tpu.memory_space<vmem>>, vector<8x128xf32>
      %cst = arith.constant 0.000000e+00 : f32
      %26 = vector.broadcast %cst : f32 to vector<8x128xf32>
      %27 = arith.select %24, %25, %26 : vector<8x128xi1>, vector<8x128xf32>
      %c0_8 = arith.constant 0 : index
      %c0_9 = arith.constant 0 : index
      %28 = vector.load %arg3[%c0_8, %c0_9] : memref<8x128xf32, #tpu.memory_space<vmem>>, vector<8x128xf32>
      %cst_10 = arith.constant 0.000000e+00 : f32
      %29 = vector.broadcast %cst_10 : f32 to vector<8x128xf32>
      %30 = arith.select %24, %28, %29 : vector<8x128xi1>, vector<8x128xf32>
      %31 = math.log %27 : vector<8x128xf32>
      %cst_11 = arith.constant -1.000000e+02 : f32
      %32 = vector.broadcast %cst_11 : f32 to vector<8x128xf32>
      %33 = arith.maximumf %31, %32 : vector<8x128xf32>
      %cst_12 = arith.constant 1.000000e+00 : f32
      %34 = vector.broadcast %cst_12 : f32 to vector<8x128xf32>
      %35 = arith.subf %34, %27 : vector<8x128xf32>
      %36 = math.log %35 : vector<8x128xf32>
      %cst_13 = arith.constant -1.000000e+02 : f32
      %37 = vector.broadcast %cst_13 : f32 to vector<8x128xf32>
      %38 = arith.maximumf %36, %37 : vector<8x128xf32>
      %39 = arith.mulf %30, %33 : vector<8x128xf32>
      %cst_14 = arith.constant 1.000000e+00 : f32
      %40 = vector.broadcast %cst_14 : f32 to vector<8x128xf32>
      %41 = arith.subf %40, %30 : vector<8x128xf32>
      %42 = arith.mulf %41, %38 : vector<8x128xf32>
      %43 = arith.addf %39, %42 : vector<8x128xf32>
      %cst_15 = arith.constant 0.000000e+00 : f32
      %44 = vector.broadcast %cst_15 : f32 to vector<8x128xf32>
      %45 = arith.subf %44, %43 : vector<8x128xf32>
      %46 = arith.mulf %27, %30 : vector<8x128xf32>
      %47 = arith.addf %27, %30 : vector<8x128xf32>
      %c0_16 = arith.constant 0 : index
      %c0_17 = arith.constant 0 : index
      %48 = vector.load %arg5[%c0_16, %c0_17] : memref<8x128xf32, #tpu.memory_space<vmem>>, vector<8x128xf32>
      %49 = vector.shape_cast %45 : vector<8x128xf32> to vector<1x8x128xf32>
      %cst_18 = arith.constant dense<0.000000e+00> : vector<8x128xf32>
      %50 = vector.multi_reduction <add>, %49, %cst_18 [0] : vector<1x8x128xf32> to vector<8x128xf32>
      %51 = arith.addf %48, %50 : vector<8x128xf32>
      %c0_19 = arith.constant 0 : index
      %c0_20 = arith.constant 0 : index
      %52 = vector.load %arg5[%c0_19, %c0_20] : memref<8x128xf32, #tpu.memory_space<vmem>>, vector<8x128xf32>
      tpu.vector_store %arg5[%c0_19, %c0_20], %51 {strides = array<i32>} : memref<8x128xf32, #tpu.memory_space<vmem>>, vector<8x128xf32>,
      %c0_21 = arith.constant 0 : index
      %c0_22 = arith.constant 0 : index
      %53 = vector.load %arg6[%c0_21, %c0_22] : memref<8x128xf32, #tpu.memory_space<vmem>>, vector<8x128xf32>
      %54 = vector.shape_cast %46 : vector<8x128xf32> to vector<1x8x128xf32>
      %cst_23 = arith.constant dense<0.000000e+00> : vector<8x128xf32>
      %55 = vector.multi_reduction <add>, %54, %cst_23 [0] : vector<1x8x128xf32> to vector<8x128xf32>
      %56 = arith.addf %53, %55 : vector<8x128xf32>
      %c0_24 = arith.constant 0 : index
      %c0_25 = arith.constant 0 : index
      %57 = vector.load %arg6[%c0_24, %c0_25] : memref<8x128xf32, #tpu.memory_space<vmem>>, vector<8x128xf32>
      tpu.vector_store %arg6[%c0_24, %c0_25], %56 {strides = array<i32>} : memref<8x128xf32, #tpu.memory_space<vmem>>, vector<8x128xf32>,
      %c0_26 = arith.constant 0 : index
      %c0_27 = arith.constant 0 : index
      %58 = vector.load %arg7[%c0_26, %c0_27] : memref<8x128xf32, #tpu.memory_space<vmem>>, vector<8x128xf32>
      %59 = vector.shape_cast %47 : vector<8x128xf32> to vector<1x8x128xf32>
      %cst_28 = arith.constant dense<0.000000e+00> : vector<8x128xf32>
      %60 = vector.multi_reduction <add>, %59, %cst_28 [0] : vector<1x8x128xf32> to vector<8x128xf32>
      %61 = arith.addf %58, %60 : vector<8x128xf32>
      %c0_29 = arith.constant 0 : index
      %c0_30 = arith.constant 0 : index
      %62 = vector.load %arg7[%c0_29, %c0_30] : memref<8x128xf32, #tpu.memory_space<vmem>>, vector<8x128xf32>
      tpu.vector_store %arg7[%c0_29, %c0_30], %61 {strides = array<i32>} : memref<8x128xf32, #tpu.memory_space<vmem>>, vector<8x128xf32>,
    } else {
    }
    %c0_i32_4 = arith.constant 0 : i32
    %13 = arith.cmpi eq, %arg1, %c0_i32_4 : i32
    %14 = arith.extui %13 : i1 to i32
    %c0_i32_5 = arith.constant 0 : i32
    %15 = arith.cmpi ne, %14, %c0_i32_5 : i32
    scf.if %15 {
      %c0 = arith.constant 0 : index
      %c0_6 = arith.constant 0 : index
      %16 = vector.load %arg5[%c0, %c0_6] : memref<8x128xf32, #tpu.memory_space<vmem>>, vector<8x128xf32>
      %c0_7 = arith.constant 0 : index
      %c0_8 = arith.constant 0 : index
      %17 = vector.load %arg6[%c0_7, %c0_8] : memref<8x128xf32, #tpu.memory_space<vmem>>, vector<8x128xf32>
      %c0_9 = arith.constant 0 : index
      %c0_10 = arith.constant 0 : index
      %18 = vector.load %arg7[%c0_9, %c0_10] : memref<8x128xf32, #tpu.memory_space<vmem>>, vector<8x128xf32>
      %19 = tpu.concatenate %16, %17, %18 in 0 : vector<8x128xf32>, vector<8x128xf32>, vector<8x128xf32> -> vector<24x128xf32>
      %20 = vector.shape_cast %19 : vector<24x128xf32> to vector<1x24x128xf32>
      %c0_11 = arith.constant 0 : index
      %c0_12 = arith.constant 0 : index
      %c0_13 = arith.constant 0 : index
      %21 = vector.load %arg4[%c0_11, %c0_12, %c0_13] : memref<1x24x128xf32, #tpu.memory_space<vmem>>, vector<1x24x128xf32>
      tpu.vector_store %arg4[%c0_11, %c0_12, %c0_13], %20 {strides = array<i32>} : memref<1x24x128xf32, #tpu.memory_space<vmem>>, vector<1x24x128xf32>,
    } else {
    }
    return
  }
  func.func @transform_0(%arg0: i32, %arg1: i32) -> (i32, i32) {
    %c1_i32 = arith.constant 1 : i32
    %0 = arith.muli %arg0, %c1_i32 : i32
    %1 = arith.addi %0, %arg1 : i32
    %c0_i32 = arith.constant 0 : i32
    %2 = arith.minsi %1, %c0_i32 : i32
    %c0_i32_0 = arith.constant 0 : i32
    %c0_i32_1 = arith.constant 0 : i32
    return %2, %c0_i32_0 : i32, i32
  }
  func.func @transform_1(%arg0: i32, %arg1: i32) -> (i32, i32) {
    %c1_i32 = arith.constant 1 : i32
    %0 = arith.muli %arg0, %c1_i32 : i32
    %1 = arith.addi %0, %arg1 : i32
    %c0_i32 = arith.constant 0 : i32
    %2 = arith.minsi %1, %c0_i32 : i32
    %c0_i32_0 = arith.constant 0 : i32
    %c0_i32_1 = arith.constant 0 : i32
    return %2, %c0_i32_0 : i32, i32
  }
  func.func @transform_2(%arg0: i32, %arg1: i32) -> (i32, i32, i32) {
    %c0_i32 = arith.constant 0 : i32
    %c0_i32_0 = arith.constant 0 : i32
    %c0_i32_1 = arith.constant 0 : i32
    return %arg0, %c0_i32, %c0_i32_0 : i32, i32, i32
  }
}

</mosaic_0001>

<bundles_post_ra>
// kernel: _loss_sums.1
= control target key start
LH: loop header
LB: loop body
LE: loop exit
PB: predicated region body
PF: predicated region fallthrough
CT: control target
= control target key end

     0   :  { %7 = vsyncpa [#allocation6], 0  ;;  %s237_s0 = inlined_call_operand.hbm [shape: f32[8,128], index: 0, kind: input, shape index: {}]   ;;  %s238_s1 = inlined_call_operand.hbm [shape: f32[8,128], index: 1, kind: input, shape index: {}]   ;;  %s239_s2 = inlined_call_operand.vmem [shape: f32[1,24,128], index: 2, kind: output, shape index: {}]  }
   0x1   :  { %8 = vsyncpa [#allocation8], 0  ;;  %s205_s9 = smov [#allocation5]   ;;  %s206_s11 = smov [#allocation7]  }
   0x2   :  { %s20_s10 = sshll.u32 %s205_s9, 4  ;;  %s35_s12 = sshll.u32 %s206_s11, 4  ;;  %s21_s10 = int_to_ptr.vmem [resolvable:$true] %s20_s10  ;;  %s36_s12 = int_to_ptr.vmem [resolvable:$true] %s35_s12 }
   0x3   :  { %s169_s13 = scalar_lea.vmem %s21_s10, 128  ;;  %p174_p1 = scmp.lt.s32.totalorder %s21_s10, %s21_s10 }
   0x4   :  { %p170_p0 = scmp.ne.s32.totalorder %s21_s10, %s169_s13  ;;  %p175_p2 = scmp.lt.s32.totalorder %s169_s13, %s169_s13 }
   0x6   :  { %p176_p3 = por %p175_p2, %p174_p1 }
   0x8   :  { %p177_p4 = pnand %p176_p3, %p170_p0 }
   0xa   :  { %180 = shalt.err (!%p177_p4)
}
   0xb   :  { %23 = dma.hbm_to_vmem [thread:$0]  %s237_s0, 128, %s21_s10, [#allocation6]  }
   0xc   :  { %s189_s16 = scalar_lea.vmem %s36_s12, 128  ;;  %p194_p6 = scmp.lt.s32.totalorder %s36_s12, %s36_s12 }
   0xd   :  { %p190_p5 = scmp.ne.s32.totalorder %s36_s12, %s189_s16  ;;  %p195_p7 = scmp.lt.s32.totalorder %s189_s16, %s189_s16 }
   0xf   :  { %p196_p8 = por %p195_p7, %p194_p6 }
  0x11   :  { %p197_p9 = pnand %p196_p8, %p190_p5 }
  0x13   :  { %200 = shalt.err (!%p197_p9)
}
  0x14   :  { %38 = dma.hbm_to_vmem [thread:$0]  %s238_s1, 128, %s36_s12, [#allocation8]  }
  0x15   :  { %201 = dma.done.wait [#allocation6], 128  }
  0x16   :  { %202 = vsyncadd [#allocation6], 4294967168 }
  0x17   :  { %203 = dma.done.wait [#allocation8], 128  }
  0x18   :  { %204 = vsyncadd [#allocation8], 4294967168  ;;  %v97_v0 = vlaneseq  ;;  %v106_v5 = vld [vmem:[#allocation5] sm:$0xff]  ;;  %v108_v6 = vld [vmem:[#allocation7] sm:$0xff] }
  0x1a   :  { %v98_v1 = vshrl.u32 %v97_v0, 7  ;;  %v100_v2 = vand.u32 127, %v97_v0 }
  0x1c   :  { %v101_v3 = vmul.u32 128, %v98_v1 }
  0x1e   :  { %v104_v4 = vadd.s32 %v101_v3, %v100_v2 }
  0x20   :  { %vm105_vm0 = vcmp.lt.s32.totalorder %v104_v4, 512 }
  0x21   :  { %v107_v7 = vsel %vm105_vm0, %v106_v5, 0.0  ;;  %v109_v8 = vsel %vm105_vm0, %v108_v6, 0.0 }
  0x22   :  { %157 = vlog2.f32 %v107_v7  ;;  %v113_v9 = vsub.f32 1.0, %v107_v7  ;;  %v122_v10 = vmul.f32 %v109_v8, %v107_v7  ;;  %v123_v11 = vadd.f32 %v109_v8, %v107_v7 }
  0x23   :  { %v118_v17 = vsub.f32 1.0, %v109_v8 }
  0x24   :  { %159 = vlog2.f32 %v113_v9  ;;  %143 = vst [vmem:[%s239_s2 + $0x8] sm:$0xff] %v122_v10  ;;  %144 = vst [vmem:[%s239_s2 + $0x10] sm:$0xff] %v123_v11 }
  0x2f   :  { %v158_v12 = vpop.eup %157 }
  0x30   :  { %v111_v13 = vmul.f32 0.6931472, %v158_v12 }
  0x31   :  { %v160_v14 = vpop.eup %159 }
  0x32   :  { %v112_v15 = vmax.f32 %v111_v13, -100.0  ;;  %v115_v16 = vmul.f32 0.6931472, %v160_v14 }
  0x34   :  { %v116_v18 = vmax.f32 %v115_v16, -100.0  ;;  %v117_v19 = vmul.f32 %v112_v15, %v109_v8 }
  0x36   :  { %v119_v20 = vmul.f32 %v118_v17, %v116_v18 }
  0x38   :  { %v120_v21 = vadd.f32 %v119_v20, %v117_v19 }
  0x3a   :  { %v121_v22 = vsub.f32 0.0, %v120_v21 }
  0x3c   :  { %142 = vst [vmem:[%s239_s2] sm:$0xff] %v121_v22 }
  0x3d   :  { %149 = vsyncpa [#allocation6], 1 }
  0x3e   :  { %150 = vsyncpa [#allocation8], 1 }

</bundles_post_ra>
